<compile_context>
chip_gen: v6e
topology: v6e:2x2x1
jax: 0.10.0
libtpu: 0.0.40
codegen_flags: <defaults>
</compile_context>

<pallas_src>
import functools

import jax
import jax.numpy as jnp
from jax.experimental import pallas as pl
from jax.experimental.pallas import tpu as pltpu


_NUM_SPLITS = 2  # leading "parallel" grid axis; exploits 2 TCs on v7x, no-op elsewhere


def _cls_objective_kernel(logits_ref, labels_ref, out_ref, acc_ref, *,
                          activate: bool, n_valid: int, tile_n: int,
                          tiles_per_split: int):
    split = pl.program_id(0)   # parallel axis (TC split)
    tile = pl.program_id(1)    # arbitrary (reduction) axis over row tiles

    @pl.when(tile == 0)
    def _():
        acc_ref[...] = jnp.zeros_like(acc_ref)

    # Upcast once inside the kernel; HBM->VMEM DMA stays in the input dtype.
    x = logits_ref[...].astype(jnp.float32)          # [tile_n, C]
    labels = labels_ref[...]                         # [tile_n, 1] int32
    tn, c = x.shape

    # Fused one-hot gather of the label logit (cross-lane gather via iota compare).
    col = jax.lax.broadcasted_iota(jnp.int32, (tn, c), 1)
    picked = jnp.sum(jnp.where(col == labels, x, 0.0), axis=-1, keepdims=True)  # [tn, 1]

    if activate:
        # NLLLoss: -input[i, label_i]
        per_row = -picked
    else:
        # CrossEntropyLoss: logsumexp(logits_i) - logits_i[label_i]
        m = jnp.max(x, axis=-1, keepdims=True)
        lse = m + jnp.log(jnp.sum(jnp.exp(x - m), axis=-1, keepdims=True))
        per_row = lse - picked

    # Mask out rows that only exist because of padding to a whole number of tiles.
    row = jax.lax.broadcasted_iota(jnp.int32, (tn, 1), 0)
    global_row = (split * tiles_per_split + tile) * tile_n + row
    per_row = jnp.where(global_row < n_valid, per_row, 0.0)

    acc_ref[...] += jnp.sum(per_row, keepdims=True)  # (1, 1) f32 accumulator

    @pl.when(tile == tiles_per_split - 1)
    def _():
        # Broadcast the per-split partial sum into an aligned (8, 128) slab.
        out_ref[...] = jnp.broadcast_to(acc_ref[...], (8, 128))


def _choose_tile_n(n: int, c: int, itemsize: int) -> int:
    """Largest row tile (multiple of 8) whose double-buffered footprint stays small."""
    c_pad = max(128, ((c + 127) // 128) * 128)      # lane padding of the VMEM tile
    budget_bytes = 4 * 1024 * 1024                  # per input buffer (x2 for double-buffering)
    t = budget_bytes // (c_pad * max(itemsize, 1))
    t = max(8, min(int(t), 1024))
    per_split = -(-n // _NUM_SPLITS)
    t = min(t, ((per_split + 7) // 8) * 8)
    return max(8, (t // 8) * 8)


def classification_objective(pred_logits, gt_label, pred_bboxes=None,
                             pred_scores=None, gt_bbox=None, *,
                             activate: bool = False, tile_n: int | None = None):
    """Pallas implementation of ClassficationObjective.forward.

    pred_logits: [N, C] float array (any float dtype; upcast to f32 inside the kernel)
    gt_label:    [N] or [N, 1] integer class indices
    Returns scalar float32 loss.
    """
    n, c = pred_logits.shape
    labels = jnp.asarray(gt_label, dtype=jnp.int32).reshape(n, 1)

    if tile_n is None:
        tile_n = _choose_tile_n(n, c, jnp.dtype(pred_logits.dtype).itemsize)
    else:
        tile_n = max(8, (int(tile_n) // 8) * 8)

    tiles_per_split = max(1, -(-n // (_NUM_SPLITS * tile_n)))
    n_pad = _NUM_SPLITS * tiles_per_split * tile_n
    if n_pad != n:
        pad = n_pad - n
        pred_logits = jnp.pad(pred_logits, ((0, pad), (0, 0)))
        labels = jnp.pad(labels, ((0, pad), (0, 0)))

    kernel = functools.partial(
        _cls_objective_kernel,
        activate=activate, n_valid=n, tile_n=tile_n,
        tiles_per_split=tiles_per_split)

    partial_slabs = pl.pallas_call(
        kernel,
        out_shape=jax.ShapeDtypeStruct((_NUM_SPLITS * 8, 128), jnp.float32),
        grid_spec=pltpu.PrefetchScalarGridSpec(
            num_scalar_prefetch=0,
            grid=(_NUM_SPLITS, tiles_per_split),
            in_specs=[
                pl.BlockSpec((tile_n, c),
                             lambda s, i: (s * tiles_per_split + i, 0)),
                pl.BlockSpec((tile_n, 1),
                             lambda s, i: (s * tiles_per_split + i, 0)),
            ],
            out_specs=pl.BlockSpec((8, 128), lambda s, i: (s, 0)),
            scratch_shapes=[pltpu.VMEM((1, 1), jnp.float32)],
        ),
        compiler_params=pltpu.CompilerParams(
            dimension_semantics=("parallel", "arbitrary"),
            vmem_limit_bytes=32 * 1024 * 1024,
        ),
    )(pred_logits, labels)

    # Each (8, 128) slab holds one per-split partial sum (broadcast); pick [0, 0].
    partial_sums = partial_slabs.reshape(_NUM_SPLITS, 8, 128)[:, 0, 0]
    return jnp.sum(partial_sums) / n


def _ref_ce(logits, labels):
    x = logits.astype(jnp.float32)
    lse = jax.nn.logsumexp(x, axis=-1)
    picked = jnp.take_along_axis(x, labels[:, None], axis=-1)[:, 0]
    return jnp.mean(lse - picked)


def _ref_nll(logits, labels):
    x = logits.astype(jnp.float32)
    picked = jnp.take_along_axis(x, labels[:, None], axis=-1)[:, 0]
    return jnp.mean(-picked)


if __name__ == "__main__":
    key = jax.random.PRNGKey(0)
    k_logits, k_labels, k_logits2, k_labels2 = jax.random.split(key, 4)

    # Small shapes consistent with [N, C] logits / [N] labels.
    N, C = 8, 16
    pred_logits = jax.random.normal(k_logits, (N, C), dtype=jnp.float32)
    gt_label = jax.random.randint(k_labels, (N,), 0, C, dtype=jnp.int32)

    # Default module config: activate=False -> CrossEntropyLoss.
    loss = classification_objective(pred_logits, gt_label, activate=False)
    loss = jax.block_until_ready(loss)
    ref = _ref_ce(pred_logits, gt_label)
    assert jnp.allclose(loss, ref, atol=1e-5, rtol=1e-5), (loss, ref)

    # activate=True -> NLLLoss.
    loss_nll = classification_objective(pred_logits, gt_label, activate=True)
    loss_nll = jax.block_until_ready(loss_nll)
    ref_nll = _ref_nll(pred_logits, gt_label)
    assert jnp.allclose(loss_nll, ref_nll, atol=1e-5, rtol=1e-5), (loss_nll, ref_nll)

    # Exercise the multi-tile accumulation + padding/mask path (forced small tile).
    N2, C2 = 40, 16
    pred_logits2 = jax.random.normal(k_logits2, (N2, C2), dtype=jnp.float32)
    gt_label2 = jax.random.randint(k_labels2, (N2,), 0, C2, dtype=jnp.int32)
    loss2 = classification_objective(pred_logits2, gt_label2, activate=False, tile_n=8)
    loss2 = jax.block_until_ready(loss2)
    ref2 = _ref_ce(pred_logits2, gt_label2)
    assert jnp.allclose(loss2, ref2, atol=1e-5, rtol=1e-5), (loss2, ref2)

    # bf16 input path (no wrapper-side f32 copy; upcast happens in-kernel).
    loss_bf16 = classification_objective(pred_logits2.astype(jnp.bfloat16),
                                         gt_label2, activate=False, tile_n=8)
    loss_bf16 = jax.block_until_ready(loss_bf16)
    ref_bf16 = _ref_ce(pred_logits2.astype(jnp.bfloat16), gt_label2)
    assert jnp.allclose(loss_bf16, ref_bf16, atol=2e-2, rtol=2e-2), (loss_bf16, ref_bf16)

    print("KERNEL_OK")
</pallas_src>

<mosaic_0001>
module attributes {stable_mosaic.version = 11 : i64} {
  func.func @_cls_objective_kernel(%arg0: i32, %arg1: i32, %arg2: memref<8x16xf32, #tpu.memory_space<vmem>>, %arg3: memref<8x1xi32, #tpu.memory_space<vmem>>, %arg4: memref<8x128xf32, #tpu.memory_space<vmem>>, %arg5: memref<1x1xf32, #tpu.memory_space<vmem>>) attributes {dimension_semantics = [#tpu.dimension_semantics<parallel>, #tpu.dimension_semantics<arbitrary>], iteration_bounds = array<i64: 2, 1>, scalar_prefetch = 0 : i64, scratch_operands = 1 : i64, tpu.core_type = #tpu.core_type<tc>, window_params = [{transform_indices = @transform_0, window_bounds = array<i64: 8, 16>}, {transform_indices = @transform_1, window_bounds = array<i64: 8, 1>}, {transform_indices = @transform_2, window_bounds = array<i64: 8, 128>}]} {
    %c0_i32 = arith.constant 0 : i32
    %0 = arith.cmpi eq, %arg1, %c0_i32 : i32
    %1 = arith.extui %0 : i1 to i32
    %c0_i32_0 = arith.constant 0 : i32
    %2 = arith.cmpi ne, %1, %c0_i32_0 : i32
    scf.if %2 {
      %cst_16 = arith.constant 0.000000e+00 : f32
      %43 = vector.broadcast %cst_16 : f32 to vector<1x1xf32>
      %c0_17 = arith.constant 0 : index
      %c0_18 = arith.constant 0 : index
      %44 = vector.load %arg5[%c0_17, %c0_18] : memref<1x1xf32, #tpu.memory_space<vmem>>, vector<1x1xf32>
      tpu.vector_store %arg5[%c0_17, %c0_18], %43 {strides = array<i32>} : memref<1x1xf32, #tpu.memory_space<vmem>>, vector<1x1xf32>,
    } else {
    }
    %c0 = arith.constant 0 : index
    %c0_1 = arith.constant 0 : index
    %3 = vector.load %arg2[%c0, %c0_1] : memref<8x16xf32, #tpu.memory_space<vmem>>, vector<8x16xf32>
    %c0_2 = arith.constant 0 : index
    %c0_3 = arith.constant 0 : index
    %4 = vector.load %arg3[%c0_2, %c0_3] : memref<8x1xi32, #tpu.memory_space<vmem>>, vector<8x1xi32>
    %5 = tpu.iota {dimensions = array<i32: 1>} : vector<8x16xi32>
    %6 = vector.broadcast %4 : vector<8x1xi32> to vector<8x16xi32>
    %7 = arith.cmpi eq, %5, %6 : vector<8x16xi32>
    %cst = arith.constant 0.000000e+00 : f32
    %8 = vector.broadcast %cst : f32 to vector<8x16xf32>
    %9 = arith.select %7, %3, %8 : vector<8x16xi1>, vector<8x16xf32>
    %cst_4 = arith.constant dense<0.000000e+00> : vector<8xf32>
    %10 = vector.multi_reduction <add>, %9, %cst_4 [1] : vector<8x16xf32> to vector<8xf32>
    %11 = vector.shape_cast %10 : vector<8xf32> to vector<8x1xf32>
    %cst_5 = arith.constant dense<0xFF800000> : vector<8xf32>
    %12 = vector.multi_reduction <maximumf>, %3, %cst_5 [1] : vector<8x16xf32> to vector<8xf32>
    %13 = vector.shape_cast %12 : vector<8xf32> to vector<8x1xf32>
    %14 = vector.broadcast %13 : vector<8x1xf32> to vector<8x16xf32>
    %15 = arith.subf %3, %14 : vector<8x16xf32>
    %16 = math.exp %15 : vector<8x16xf32>
    %cst_6 = arith.constant dense<0.000000e+00> : vector<8xf32>
    %17 = vector.multi_reduction <add>, %16, %cst_6 [1] : vector<8x16xf32> to vector<8xf32>
    %18 = vector.shape_cast %17 : vector<8xf32> to vector<8x1xf32>
    %19 = math.log %18 : vector<8x1xf32>
    %20 = arith.addf %13, %19 : vector<8x1xf32>
    %21 = arith.subf %20, %11 : vector<8x1xf32>
    %22 = tpu.iota {dimensions = array<i32: 0>} : vector<8x1xi32>
    %c1_i32 = arith.constant 1 : i32
    %23 = arith.muli %arg0, %c1_i32 : i32
    %24 = arith.addi %23, %arg1 : i32
    %c8_i32 = arith.constant 8 : i32
    %25 = arith.muli %24, %c8_i32 : i32
    %26 = vector.broadcast %25 : i32 to vector<8x1xi32>
    %27 = arith.addi %26, %22 : vector<8x1xi32>
    %c8_i32_7 = arith.constant 8 : i32
    %28 = vector.broadcast %c8_i32_7 : i32 to vector<8x1xi32>
    %29 = arith.cmpi slt, %27, %28 : vector<8x1xi32>
    %cst_8 = arith.constant 0.000000e+00 : f32
    %30 = vector.broadcast %cst_8 : f32 to vector<8x1xf32>
    %31 = arith.select %29, %21, %30 : vector<8x1xi1>, vector<8x1xf32>
    %c0_9 = arith.constant 0 : index
    %c0_10 = arith.constant 0 : index
    %32 = vector.load %arg5[%c0_9, %c0_10] : memref<1x1xf32, #tpu.memory_space<vmem>>, vector<1x1xf32>
    %33 = vector.shape_cast %31 : vector<8x1xf32> to vector<1x8x1xf32>
    %cst_11 = arith.constant dense<0.000000e+00> : vector<1xf32>
    %34 = vector.multi_reduction <add>, %33, %cst_11 [1, 2] : vector<1x8x1xf32> to vector<1xf32>
    %35 = vector.shape_cast %34 : vector<1xf32> to vector<1x1x1xf32>
    %36 = vector.extract %35[0, 0, 0] : f32 from vector<1x1x1xf32>
    %37 = vector.broadcast %36 : f32 to vector<1x1xf32>
    %38 = arith.addf %32, %37 : vector<1x1xf32>
    %c0_12 = arith.constant 0 : index
    %c0_13 = arith.constant 0 : index
    %39 = vector.load %arg5[%c0_12, %c0_13] : memref<1x1xf32, #tpu.memory_space<vmem>>, vector<1x1xf32>
    tpu.vector_store %arg5[%c0_12, %c0_13], %38 {strides = array<i32>} : memref<1x1xf32, #tpu.memory_space<vmem>>, vector<1x1xf32>,
    %c0_i32_14 = arith.constant 0 : i32
    %40 = arith.cmpi eq, %arg1, %c0_i32_14 : i32
    %41 = arith.extui %40 : i1 to i32
    %c0_i32_15 = arith.constant 0 : i32
    %42 = arith.cmpi ne, %41, %c0_i32_15 : i32
    scf.if %42 {
      %c0_16 = arith.constant 0 : index
      %c0_17 = arith.constant 0 : index
      %43 = vector.load %arg5[%c0_16, %c0_17] : memref<1x1xf32, #tpu.memory_space<vmem>>, vector<1x1xf32>
      %44 = vector.shape_cast %43 : vector<1x1xf32> to vector<1x1xf32>
      %45 = vector.broadcast %44 : vector<1x1xf32> to vector<8x128xf32>
      %c0_18 = arith.constant 0 : index
      %c0_19 = arith.constant 0 : index
      %46 = vector.load %arg4[%c0_18, %c0_19] : memref<8x128xf32, #tpu.memory_space<vmem>>, vector<8x128xf32>
      tpu.vector_store %arg4[%c0_18, %c0_19], %45 {strides = array<i32>} : memref<8x128xf32, #tpu.memory_space<vmem>>, vector<8x128xf32>,
    } else {
    }
    return
  }
  func.func @transform_0(%arg0: i32, %arg1: i32) -> (i32, i32) {
    %c1_i32 = arith.constant 1 : i32
    %0 = arith.muli %arg0, %c1_i32 : i32
    %1 = arith.addi %0, %arg1 : i32
    %c0_i32 = arith.constant 0 : i32
    %c0_i32_0 = arith.constant 0 : i32
    return %1, %c0_i32 : i32, i32
  }
  func.func @transform_1(%arg0: i32, %arg1: i32) -> (i32, i32) {
    %c1_i32 = arith.constant 1 : i32
    %0 = arith.muli %arg0, %c1_i32 : i32
    %1 = arith.addi %0, %arg1 : i32
    %c0_i32 = arith.constant 0 : i32
    %c0_i32_0 = arith.constant 0 : i32
    return %1, %c0_i32 : i32, i32
  }
  func.func @transform_2(%arg0: i32, %arg1: i32) -> (i32, i32) {
    %c0_i32 = arith.constant 0 : i32
    %c0_i32_0 = arith.constant 0 : i32
    return %arg0, %c0_i32 : i32, i32
  }
}

</mosaic_0001>

<bundles_post_ra>
// kernel: tpu_custom_call.1
= control target key start
LH: loop header
LB: loop body
LE: loop exit
PB: predicated region body
PF: predicated region fallthrough
CT: control target
= control target key end

     0   :  { %7 = vsyncpa [#allocation4], 0  ;;  %s632_s0 = inlined_call_operand.vmem [shape: f32[16,16], index: 0, kind: input, shape index: {}]   ;;  %s633_s1 = inlined_call_operand.vmem [shape: s32[16,1], index: 1, kind: input, shape index: {}]   ;;  %s634_s2 = inlined_call_operand.hbm [shape: f32[16,128], index: 2, kind: output, shape index: {}]  }
   0x1   :  { %9 = vsyncpa [#allocation4 + $0x1], 0  ;;  %s520_s9 = smov 0   ;;  %s522_s10 = smov 0  }
   0x2   :  { %s524_s11 = smov 0   ;;  %s526_s12 = smov 0  }
   0x3   :  { %s528_s13 = smov 0   ;;  %s530_s14 = smov 0  }
   0x4 LB: > { %s345_s15 = sadd.s32 4294967295, %s500_s14   ;;  %s346_s16 = sadd.s32 4294967294, %s500_s14   ;;  %s500_s14 = sphi %s530_s14, %s15_s14   ;;  %s496_s13 = sphi %s528_s13, %s641_s13   ;;  %s492_s12 = sphi %s526_s12, %s640_s12   ;;  %s488_s11 = sphi %s524_s11, %s639_s11   ;;  %s484_s10 = sphi %s522_s10, %s638_s10   ;;  %s480_s9 = sphi %s520_s9, %s637_s9  }
   0x5   : > { %s27_s17 = sadd.s32 1, %s496_s13  ;;  %s90_s18 = sadd.s32 1, %s488_s11 }
   0x6   : > { %p29_p0 = scmp.ge.s32.totalorder %s27_s17, 2  ;;  %p100_p1 = scmp.ne.s32.totalorder %s488_s11, %s484_s10 }
   0x7   : > { %p101_p2 = scmp.eq.s32.totalorder %s345_s15, 1  ;;  %p106_p3 = scmp.ne.s32.totalorder %s484_s10, %s480_s9 }
   0x8   : > { %s643_s17 = smov (%p29_p0, %s27_s17), 0  ;;  %p107_p5 = scmp.eq.s32.totalorder %s346_s16, 1 }
   0x9   : > { %p560_p4 = por %p101_p2, %p100_p1  ;;  %s87_s20 = ssub.s32 %s496_s13, %s643_s17 }
   0xa   : > { %p349_p6 = scmp.ge.s32.totalorder %s500_s14, 1  ;;  %p88_p7 = scmp.eq.s32.totalorder %s87_s20, 0 }
   0xb   : > { %p567_p8 = por %p107_p5, %p106_p3  ;;  %p143_p9 = scmp.lt.s32.totalorder %s500_s14, 3 }
   0xc   : > { %s573_s22 = scalar_select %p88_p7, %s488_s11, %s90_s18  }
   0xd   : > { %p144_p10 = pnand %p349_p6, %p143_p9 }
   0xe   : > { %p171_p11 = scmp.lt.s32.totalorder (!%p144_p10), %s492_s12, 1  ;;  %s353_s3 = sshll.u32 (!%p144_p10), %s492_s12, 3 }
   0xf   : > { %147 = sbr.rel (%p144_p10) target bundleno = 691 (0x2b3), region = 28  ;;  %s167_s5 = sand.u32 (!%p144_p10), 1, %s484_s10  }
  0x10   : > { %s350_s6 = sshll.u32 (!%p144_p10), %s167_s5, 3  ;;  %s356_s15 = sshll.u32 (!%p144_p10), %s492_s12, 7 }
  0x11   : > { %s169_s7 = scalar_lea.vmem (!%p144_p10), [#allocation3], %s350_s6  ;;  %s264_s20 = scalar_lea.hbm (!%p144_p10), %s634_s2, %s356_s15 }
  0x12   : > { %s266_s8 = sshll.u32 (!%p144_p10), %s169_s7, 4  ;;  %s504_s25 = smov (!%p144_p10), [#allocation3]   ;;  %s589_s8 = int_to_ptr.vmem [resolvable:$true] %s266_s8 }
  0x13   : > { %s428_s26 = sshll.u32 (!%p144_p10), %s504_s25, 4  ;;  %s429_s26 = int_to_ptr.vmem [resolvable:$false] %s428_s26 }
  0x14   : > { %v502_v0 = vmov 0   ;;  %s172_s23 = scalar_select %p171_p11, %s492_s12, 1  ;;  %vm197_vm0 = vcmask 130048   ;;  %v190_v7 = vlaneseq  ;;  %v218_v16 = vstv %s353_s3 }
  0x15   : > { %418 = vset.pattern.permute.xlu0 %v502_v0  ;;  %419 = vset.pattern.permute.xlu1 %v502_v0  ;;  %vm223_vm3 = vcmask 7168   ;;  %vm186_vm4 = vcmask 0   ;;  %v503_v25 = vmov 0.0   ;;  %s430_s12 = scalar_lea.vmem %s429_s26, 256  ;;  %p431_p1 = scmp.lt.s32.totalorder %s589_s8, %s429_s26 }
  0x16   : > { %s351_s24 = sshll.u32 %s172_s23, 3  ;;  %v191_v8 = vand.u32 127, %v190_v7  ;;  %v215_v15 = vshrl.u32 %v190_v7, 7  ;;  %187 = vst.msk [vmem:[#allocation2] sm:$0x1] %vm186_vm4, %v503_v25  ;;  %s253_s23 = scalar_lea.sflag [#allocation4], %s167_s5 }
  0x17   : > { %s174_s27 = scalar_lea.vmem %s632_s0, %s351_s24  ;;  %s180_s30 = scalar_lea.vmem %s633_s1, %s351_s24 }
  0x18   : > { %v188_v1 = vld [vmem:[%s174_s27] sm:$0xff]  ;;  %v219_v18 = vadd.s32 %v218_v16, %v215_v15  ;;  %s424_s24 = scalar_lea.vmem %s589_s8, 128 }
  0x19   : > { %v201_v2 = vsel %vm197_vm0, %v188_v1, -inf  ;;  %v189_v3 = vld [vmem:[%s180_s30] sm:$0xff]  ;;  %p425_p12 = scmp.ne.s32.totalorder %s589_s8, %s424_s24  ;;  %p432_p2 = scmp.lt.s32.totalorder %s430_s12, %s424_s24 }
  0x1a   : > { %202 = vmax.xlane.f32.xlu0 %v201_v2  ;;  %vm220_vm2 = vcmp.lt.s32.totalorder %v219_v18, 8 }
  0x1b   : > { %p426_p13 = pnand %p425_p12, %p560_p4  ;;  %p433_p3 = por %p432_p2, %p431_p1 }
  0x1d   : > { %v222_v33 = vld [vmem:[#allocation2] sm:$0x1]  ;;  %p427_p0 = pneg %p426_p13 }
  0x1f   : > { %p434_p5 = pnand %p433_p3, %p427_p0 }
  0x30   : > { %193 = vperm.xlu0 %418, %v189_v3  }
  0xa3   : > { %v203_v4 = vpop.xlane.xlu0 %202 }
  0xa4   : > { %v204_v5 = vsub.f32 %v188_v1, %v203_v4 }
  0xa6   : > { %v205_v6 = vmul.f32 1.442695, %v204_v5 }
  0xa8   : > { %420 = vpow2.f32 %v205_v6 }
  0xab   : > { %v194_v9 = vpop.permute.xlu0 %193 }
  0xac   : > { %vm195_vm1 = vcmp.eq.s32.totalorder %v191_v8, %v194_v9 }
  0xad   : > { %v196_v11 = vsel %vm195_vm1, %v188_v1, 0.0 }
  0xae   : > { %v198_v13 = vsel %vm197_vm0, %v196_v11, 0.0 }
  0xb5   : > { %v421_v10 = vpop.eup %420 }
  0xb6   : > { %v207_v12 = vsel %vm197_vm0, %v421_v10, 0.0 }
  0xb7   : > { %208 = vadd.xlane.f32.xlu1 %v207_v12 }
  0xbb   : > { %199 = vadd.xlane.f32.xlu1 %v198_v13 }
 0x140   : > { %v209_v14 = vpop.xlane.xlu1 %208 }
 0x141   : > { %422 = vlog2.f32 %v209_v14 }
 0x144   : > { %v200_v20 = vpop.xlane.xlu1 %199 }
 0x14e   : > { %v423_v17 = vpop.eup %422 }
 0x14f   : > { %v211_v19 = vmul.f32 0.6931472, %v423_v17 }
 0x151   : > { %v212_v21 = vadd.f32 %v211_v19, %v203_v4 }
 0x153   : > { %v213_v22 = vsub.f32 %v212_v21, %v200_v20 }
 0x155   : > { %v221_v23 = vsel %vm220_vm2, %v213_v22, 0.0 }
 0x156   : > { %v224_v24 = vsel %vm223_vm3, %v221_v23, 0.0 }
 0x157   : > { %225 = vadd.xlane.f32.xlu1 %v224_v24 }
 0x1e0   : > { %v226_v26 = vpop.xlane.xlu1 %225 }
 0x1e1   : > { %v227_v27 = vrot.slane %v226_v26, 4 }
 0x1e3   : > { %v228_v28 = vadd.f32 %v227_v27, %v226_v26 }
 0x1e5   : > { %v229_v29 = vrot.slane %v228_v28, 2 }
 0x1e7   : > { %v230_v30 = vadd.f32 %v229_v29, %v228_v28 }
 0x1e9   : > { %v231_v31 = vrot.slane %v230_v30, 1 }
 0x1eb   : > { %v232_v32 = vadd.f32 %v231_v31, %v230_v30 }
 0x1ed   : > { %359 = vpush %v232_v32 }
 0x21e   : > { %s360_s4 = spop %359 }
 0x21f   : > { %v234_v34 = vstv %s360_s4 }
 0x220   : > { %v235_v35 = vadd.f32 %v234_v34, %v222_v33 }
 0x222   : > { %237 = vst.msk [vmem:[#allocation2] sm:$0x1] %vm186_vm4, %v235_v35 }
 0x229   : > { %v354_v36 = vld [vmem:[#allocation2] ss:$0 sm:$0xff] }
 0x22a   : > { %248 = vperm.xlu1 %419, %v354_v36  }
 0x2a5   : > { %v249_v37 = vpop.permute.xlu1 %248 }
 0x2a6   : > { %251 = vst [vmem:[%s169_s7] sm:$0xff] %v249_v37 }
 0x2a7   : > { %437 = shalt.err (!%p434_p5)
}
 0x2a8   : > { %s438_s27 = scalar_lea.hbm %s264_s20, 128  ;;  %s442_s30 = scalar_lea.hbm %s634_s2, 256 }
 0x2a9   : > { %p439_p6 = scmp.ne.s32.totalorder %s264_s20, %s438_s27  ;;  %p443_p10 = scmp.lt.s32.totalorder %s264_s20, %s634_s2 }
 0x2aa   : > { %p444_p11 = scmp.lt.s32.totalorder %s442_s30, %s438_s27 }
 0x2ab   : > { %p440_p7 = pnand %p439_p6, %p560_p4 }
 0x2ac   : > { %p445_p12 = por %p444_p11, %p443_p10 }
 0x2ad   : > { %p441_p9 = pneg %p440_p7 }
 0x2af   : > { %p446_p13 = pnand %p445_p12, %p441_p9 }
 0x2b1   : > { %449 = shalt.err (!%p446_p13)
}
 0x2b2   : > { %361 = dma.vmem_to_hbm [thread:$0]  (%p560_p4), %s589_s8, 128, %s264_s20, %s253_s23  }
 0x2b3 PF: > { %p367_p0 = scmp.ge.s32.totalorder %s500_s14, 2  ;;  %s278_s5 = sand.u32 1, %s480_s9  }
 0x2b4   : > { %s279_s6 = scalar_lea.sflag [#allocation4], %s278_s5 }
 0x2b5   : > { %p364_p1 = pnand %p367_p0, %p567_p8 }
 0x2b7   : > { %p365_p2 = pneg %p364_p1 }
 0x2b9   : > { %475 = dma.done.wait (%p365_p2), %s279_s6, 128  }
 0x2ba   : > { %477 = vsyncadd (%p365_p2), %s279_s6, 4294967168  ;;  %s15_s14 = sadd.s32 1, %s500_s14   ;;  %s637_s9 = smov %s484_s10 }
 0x2bb   : > { %p12_p3 = scmp.ge.s32.totalorder %s15_s14, 4   ;;  %s638_s10 = smov %s488_s11 }
 0x2bc   : > { %s639_s11 = smov %s573_s22  ;;  %s640_s12 = smov %s496_s13 }
 0x2bd   : > { %s641_s13 = smov %s643_s17  ;;  %14 = sbr.rel (!%p12_p3) target bundleno = 4 (0x4), region = 74 }
 0x2c2   :  { %284 = vsyncpa [#allocation4], 1 }
 0x2c3   :  { %286 = vsyncpa [#allocation4 + $0x1], 1 }

</bundles_post_ra>
